<compile_context>
chip_gen: v6e
topology: v6e:2x2x1
jax: 0.10.0
libtpu: 0.0.40
codegen_flags: <defaults>
</compile_context>

<pallas_src>
from functools import partial

import jax
import jax.numpy as jnp
from jax import lax
from jax.experimental import pallas as pl
from jax.experimental.pallas import tpu as pltpu

NUM_AFS = 3
USE_TANH = True
C_CONST = 10.0


def _attention_kernel(stacked_ref, decT_ref, mc_ref,
                      wpack_ref, bsum_ref, v3_ref,
                      wda_ref, wdb_ref, bd_ref, seg_ref,
                      probs_ref, hidT_ref):
    # One grid step == one tile of TB batch elements, lane-folded (L = TB*S lanes,
    # lane l = b*S + s).
    H = decT_ref.shape[0]
    stacked = stacked_ref[...]        # [3H, L]: rows [0:H]=static, [H:2H]=dynamic, [2H:3H]=dec (lane-expanded)
    seg = seg_ref[...]                # [L, TB]  0/1 segment-sum matrix (Seg[b*S+s, b] = 1)
    mask = mc_ref[0:1, :]             # [1, L]   additive mask (0 / -inf)
    cls = mc_ref[1:2, :]              # [1, L]   attention-vector class (0./1./2.), exact f32 constants

    # e = W1@static + W2@dynamic + Wl@dec_expanded as a single K=3H MXU matmul.
    e = jnp.dot(wpack_ref[...], stacked, preferred_element_type=jnp.float32)     # [H, L] f32
    # tanh in the compute dtype (bf16 EUP path on v6e/v7x; upconverted on v5e).
    t = jnp.tanh((e + bsum_ref[...]).astype(stacked.dtype))                      # [H, L]

    # All three attention vectors at once, then per-position select
    # (V0 for s==0, V1 for 1..num_afs, V2 otherwise).
    logits3 = jnp.dot(v3_ref[...], t, preferred_element_type=jnp.float32)        # [3, L]
    logits = jnp.where(cls == 0.0, logits3[0:1, :],
                       jnp.where(cls == 1.0, logits3[1:2, :], logits3[2:3, :]))  # [1, L]

    if USE_TANH:
        scores = C_CONST * jnp.tanh(logits) + mask                               # [1, L]
        # |C*tanh| <= C, so exp(scores - C) never overflows; softmax is per-row
        # shift invariant -> no per-row max reduction needed; masked lanes -> 0.
        ex = jnp.exp(scores - C_CONST)
    else:
        # TODO(synk): global (not per-batch) max shift; only safe because the spec
        # sets use_tahn=True — implement a segment max before enabling this path.
        scores = logits + mask
        ex = jnp.exp(scores - jnp.max(scores))

    exc = ex.astype(stacked.dtype)

    # Un-normalized context + per-batch denominators via segment-sum matmuls.
    # Doing the big [H,L]@[L,TB] matmul on un-normalized weights lets it issue
    # immediately after `ex`; the reciprocal/normalization overlaps underneath.
    st = stacked[0:H, :]                                                         # static rows (sublane-aligned slice)
    ctx_raw = jnp.dot(st * exc, seg, preferred_element_type=jnp.float32)         # [H, TB]
    denom = jnp.dot(exc, seg, preferred_element_type=jnp.float32)                # [1, TB]

    # NOTE: a fully-masked row gives denom == 0 -> inf/NaN probs, exactly like the
    # original PyTorch module (softmax over all -inf).
    inv = pl.reciprocal(denom, approx=True)          # EUP
    inv = inv * (2.0 - denom * inv)                  # Newton step 1
    inv = inv * (2.0 - denom * inv)                  # Newton step 2 (~f32-exact)

    ctxT = ctx_raw * inv                                                         # [H, TB] normalized context

    # Expand inv back over each batch element's S lanes: inv @ Seg^T
    # (contraction on Seg's last dim; no dense R expansion matrix is shipped).
    inv_exp = lax.dot_general(inv.astype(seg.dtype), seg,
                              dimension_numbers=(((1,), (1,)), ((), ())),
                              preferred_element_type=jnp.float32)                # [1, L]
    probs_ref[...] = ex * inv_exp                                                # lane-dense [1, L] slab

    # linear_for_dec_hidden on concat([dec, context]) split into two small matmuls (kept f32).
    preT = (jnp.dot(wda_ref[...], decT_ref[...], preferred_element_type=jnp.float32)
            + jnp.dot(wdb_ref[...], ctxT, preferred_element_type=jnp.float32)
            + bd_ref[...])                                                       # [H, TB]
    hidT_ref[...] = C_CONST * jnp.tanh(preT)


@partial(jax.jit, static_argnames=("compute_dtype",))
def attention_forward(dec_hidden, static_emb, dynamic_emb, mask, params,
                      compute_dtype=jnp.bfloat16):
    """dec_hidden [B,H], static/dynamic [B,H,S], mask [B,S] -> (probs [B,S], hidden [1,B,H])."""
    B, H, S = static_emb.shape
    (W1, b1, W2, b2, Wl, bl, V0, V1, V2, Wd, bd) = params

    # ---- batch tiling: TB batch elements folded into the lane dim per grid step ----
    # MAX_TB=128: >=2 grid tiles for realistic batches (v7x dual-TensorCore via
    # "parallel"), keeps the tiled lane dims multiples of 128, and keeps the
    # per-tile VMEM footprint far below v5e's 16 MiB scoped default.
    MAX_TB = 128
    TB = B if B <= MAX_TB else MAX_TB
    Bp = ((B + TB - 1) // TB) * TB
    num_tiles = Bp // TB
    L = TB * S

    pad = Bp - B
    if pad:
        # Zero-pad (mask pad stays 0, not -inf) so padded rows stay finite; sliced off at the end.
        static_emb = jnp.pad(static_emb, ((0, pad), (0, 0), (0, 0)))
        dynamic_emb = jnp.pad(dynamic_emb, ((0, pad), (0, 0), (0, 0)))
        dec_hidden = jnp.pad(dec_hidden, ((0, pad), (0, 0)))
        mask = jnp.pad(mask, ((0, pad), (0, 0)))

    # ---- wrapper-side layout plumbing (fused / constant-folded under jit) ----
    # TODO(synk): in a decode loop, keep static_emb permanently in this lane-folded
    # [H, B*S] layout across steps instead of re-transposing it every call.
    st_f = jnp.transpose(static_emb, (1, 0, 2)).reshape(H, Bp * S)
    dy_f = jnp.transpose(dynamic_emb, (1, 0, 2)).reshape(H, Bp * S)
    decT = dec_hidden.T.astype(jnp.float32)                      # [H, Bp]
    dec_exp = jnp.repeat(decT, S, axis=1)                        # [H, Bp*S]: column b*S+s <- dec[:, b]
    stacked = jnp.concatenate([st_f, dy_f, dec_exp], axis=0).astype(compute_dtype)   # [3H, Bp*S]

    # Per-lane attention-vector class (exact f32 constants; never routed through bf16)
    # fused with the additive mask into one [2, L] side input.
    s_idx = jnp.arange(Bp * S) % S
    cls_f = jnp.where(s_idx == 0, 0.0, jnp.where(s_idx <= NUM_AFS, 1.0, 2.0)).astype(jnp.float32)
    maskcls = jnp.concatenate([mask.reshape(1, Bp * S).astype(jnp.float32),
                               cls_f[None, :]], axis=0)          # [2, Bp*S]

    # Parameters packed once per call; layouts chosen so the kernel needs no transposes.
    Wpack = jnp.concatenate([W1, W2, Wl], axis=1).astype(compute_dtype)   # [H, 3H]
    bsum = (b1 + b2 + bl).astype(jnp.float32)[:, None]                    # [H, 1]
    V3 = jnp.concatenate([V0, V1, V2], axis=0).astype(compute_dtype)      # [3, H]
    WdA = Wd[:, :H].astype(jnp.float32)                                   # acts on decoder hidden
    WdB = Wd[:, H:].astype(jnp.float32)                                   # acts on context
    bd_col = bd.astype(jnp.float32)[:, None]                              # [H, 1]

    # Segment-sum matrix Seg[b*S+s, b] = 1 (0/1, exact in bf16); constant per (TB, S).
    Seg = jnp.repeat(jnp.eye(TB, dtype=jnp.float32), S, axis=0).astype(compute_dtype)   # [L, TB]

    full = lambda t: (0, 0)
    tile = lambda t: (0, t)

    probs_f, hidT = pl.pallas_call(
        _attention_kernel,
        out_shape=(jax.ShapeDtypeStruct((1, Bp * S), jnp.float32),
                   jax.ShapeDtypeStruct((H, Bp), jnp.float32)),
        grid_spec=pltpu.PrefetchScalarGridSpec(
            num_scalar_prefetch=0,
            grid=(num_tiles,),
            in_specs=[
                pl.BlockSpec((3 * H, L), tile),   # stacked [static; dynamic; dec_expanded]
                pl.BlockSpec((H, TB), tile),      # decoder hidden (columns)
                pl.BlockSpec((2, L), tile),       # [mask; class]
                pl.BlockSpec((H, 3 * H), full),   # packed [W1 W2 Wl]
                pl.BlockSpec((H, 1), full),       # b1 + b2 + bl
                pl.BlockSpec((3, H), full),       # [V0; V1; V2]
                pl.BlockSpec((H, H), full),       # Wd[:, :H]
                pl.BlockSpec((H, H), full),       # Wd[:, H:]
                pl.BlockSpec((H, 1), full),       # bd
                pl.BlockSpec((L, TB), full),      # Seg (segment sum; DMA'd once — constant block index)
            ],
            out_specs=[
                pl.BlockSpec((1, L), tile),       # probs (lane-dense slab)
                pl.BlockSpec((H, TB), tile),      # hidden (columns)
            ],
        ),
        compiler_params=pltpu.CompilerParams(
            dimension_semantics=("parallel",)),   # batch tiles independent -> megacore on v7x
    )(stacked, decT, maskcls, Wpack, bsum, V3, WdA, WdB, bd_col, Seg)

    probs = probs_f.reshape(Bp, S)[:B]            # [B, S]
    hidden = hidT.T[:B][None, :, :]               # [1, B, H]
    return probs, hidden


def reference_forward(dec_hidden, static_emb, dynamic_emb, mask, params):
    (W1, b1, W2, b2, Wl, bl, V0, V1, V2, Wd, bd) = params
    B, H, S = static_emb.shape
    e = jnp.einsum('oi,bis->bos', W1, static_emb) + b1[None, :, None]
    e_dyna = jnp.einsum('oi,bis->bos', W2, dynamic_emb) + b2[None, :, None]
    e_plus = (dec_hidden @ Wl.T + bl)[:, :, None]
    t = jnp.tanh(e + e_dyna + e_plus)
    Vmix = jnp.concatenate(
        [V0, jnp.tile(V1, (NUM_AFS, 1)), jnp.tile(V2, (S - NUM_AFS - 1, 1))], axis=0)
    logits = jnp.einsum('sh,bhs->bs', Vmix, t)
    scores = (C_CONST * jnp.tanh(logits) if USE_TANH else logits) + mask
    probs = jax.nn.softmax(scores, axis=1)
    context = jnp.einsum('bhs,bs->bh', static_emb, probs)
    concat = jnp.concatenate([dec_hidden, context], axis=1)
    hidden = C_CONST * jnp.tanh(concat @ Wd.T + bd)
    return probs, hidden[None, :, :]


def make_params(key, H):
    ks = jax.random.split(key, 11)
    xav = (6.0 / (1 + H)) ** 0.5
    lin = 1.0 / (H ** 0.5)
    lin2 = 1.0 / ((2 * H) ** 0.5)
    u = lambda k, shape, bound: jax.random.uniform(k, shape, jnp.float32, -bound, bound)
    W1 = u(ks[0], (H, H), lin); b1 = u(ks[1], (H,), lin)       # context_linear1 (1x1 conv)
    W2 = u(ks[2], (H, H), lin); b2 = u(ks[3], (H,), lin)       # context_linear2 (1x1 conv)
    Wl = u(ks[4], (H, H), lin); bl = u(ks[5], (H,), lin)       # linear
    V0 = u(ks[6], (1, H), xav); V1 = u(ks[7], (1, H), xav); V2 = u(ks[8], (1, H), xav)
    Wd = u(ks[9], (H, 2 * H), lin2); bd = u(ks[10], (H,), lin2)  # linear_for_dec_hidden
    return (W1, b1, W2, b2, Wl, bl, V0, V1, V2, Wd, bd)


if __name__ == "__main__":
    B, H, S = 2, 32, 8
    key = jax.random.PRNGKey(0)
    k_dec, k_st, k_dy, k_par = jax.random.split(key, 4)

    dec_hidden = jax.random.normal(k_dec, (B, H), jnp.float32)
    static_emb = jax.random.normal(k_st, (B, H, S), jnp.float32)
    dynamic_emb = jax.random.normal(k_dy, (B, H, S), jnp.float32)
    # mask: 0 where allowed, -inf where forbidden (at least one allowed position per row)
    mask = jnp.zeros((B, S), jnp.float32)
    mask = mask.at[0, 2].set(-jnp.inf).at[1, 5].set(-jnp.inf)

    params = make_params(k_par, H)

    probs_ref, hidden_ref = reference_forward(dec_hidden, static_emb, dynamic_emb, mask, params)

    # --- f32 compute path: rigorous correctness check against the pure-JAX reference ---
    probs32, hidden32 = attention_forward(dec_hidden, static_emb, dynamic_emb, mask, params,
                                          compute_dtype=jnp.float32)
    jax.block_until_ready((probs32, hidden32))
    assert probs32.shape == (B, S) and hidden32.shape == (1, B, H)
    assert jnp.allclose(probs32, probs_ref, atol=1e-5, rtol=1e-5)
    assert jnp.allclose(hidden32, hidden_ref, atol=1e-4, rtol=1e-4)

    # --- default bf16 compute path (perf config): loose sanity checks only ---
    # bf16 operand rounding is amplified ~10x by the C*tanh scoring, so the f32
    # tolerances above do not apply; structural correctness is established by the
    # f32 path, this only guards against gross bf16-path bugs.
    probs16, hidden16 = attention_forward(dec_hidden, static_emb, dynamic_emb, mask, params)
    jax.block_until_ready((probs16, hidden16))
    assert probs16.shape == (B, S) and hidden16.shape == (1, B, H)
    assert bool(jnp.all(jnp.isfinite(probs16))) and bool(jnp.all(jnp.isfinite(hidden16)))
    assert jnp.allclose(jnp.sum(probs16, axis=1), jnp.ones((B,)), atol=5e-2)
    assert float(jnp.max(jnp.abs(probs16 - probs_ref))) < 0.2
    assert float(jnp.max(jnp.abs(hidden16 - hidden_ref))) < 2.5

    print("KERNEL_OK")
</pallas_src>

<mosaic_0001>
module attributes {stable_mosaic.version = 11 : i64} {
  func.func @_attention_kernel(%arg0: i32, %arg1: memref<96x16xf32, #tpu.memory_space<vmem>>, %arg2: memref<32x2xf32, #tpu.memory_space<vmem>>, %arg3: memref<2x16xf32, #tpu.memory_space<vmem>>, %arg4: memref<32x96xf32, #tpu.memory_space<vmem>>, %arg5: memref<32x1xf32, #tpu.memory_space<vmem>>, %arg6: memref<3x32xf32, #tpu.memory_space<vmem>>, %arg7: memref<32x32xf32, #tpu.memory_space<vmem>>, %arg8: memref<32x32xf32, #tpu.memory_space<vmem>>, %arg9: memref<32x1xf32, #tpu.memory_space<vmem>>, %arg10: memref<16x2xf32, #tpu.memory_space<vmem>>, %arg11: memref<1x16xf32, #tpu.memory_space<vmem>>, %arg12: memref<32x2xf32, #tpu.memory_space<vmem>>) attributes {dimension_semantics = [#tpu.dimension_semantics<parallel>], iteration_bounds = array<i64: 1>, scalar_prefetch = 0 : i64, scratch_operands = 0 : i64, tpu.core_type = #tpu.core_type<tc>, window_params = [{transform_indices = @transform_0, window_bounds = array<i64: 96, 16>}, {transform_indices = @transform_1, window_bounds = array<i64: 32, 2>}, {transform_indices = @transform_2, window_bounds = array<i64: 2, 16>}, {pipeline_mode = #tpu.pipeline_mode<synchronous>, transform_indices = @transform_3, window_bounds = array<i64: 32, 96>}, {pipeline_mode = #tpu.pipeline_mode<synchronous>, transform_indices = @transform_4, window_bounds = array<i64: 32, 1>}, {pipeline_mode = #tpu.pipeline_mode<synchronous>, transform_indices = @transform_5, window_bounds = array<i64: 3, 32>}, {pipeline_mode = #tpu.pipeline_mode<synchronous>, transform_indices = @transform_6, window_bounds = array<i64: 32, 32>}, {pipeline_mode = #tpu.pipeline_mode<synchronous>, transform_indices = @transform_7, window_bounds = array<i64: 32, 32>}, {pipeline_mode = #tpu.pipeline_mode<synchronous>, transform_indices = @transform_8, window_bounds = array<i64: 32, 1>}, {pipeline_mode = #tpu.pipeline_mode<synchronous>, transform_indices = @transform_9, window_bounds = array<i64: 16, 2>}, {transform_indices = @transform_10, window_bounds = array<i64: 1, 16>}, {transform_indices = @transform_11, window_bounds = array<i64: 32, 2>}]} {
    %c0 = arith.constant 0 : index
    %c0_0 = arith.constant 0 : index
    %0 = vector.load %arg1[%c0, %c0_0] : memref<96x16xf32, #tpu.memory_space<vmem>>, vector<96x16xf32>
    %c0_1 = arith.constant 0 : index
    %c0_2 = arith.constant 0 : index
    %1 = vector.load %arg10[%c0_1, %c0_2] : memref<16x2xf32, #tpu.memory_space<vmem>>, vector<16x2xf32>
    %c0_3 = arith.constant 0 : index
    %c0_4 = arith.constant 0 : index
    %2 = vector.load %arg3[%c0_3, %c0_4] : memref<2x16xf32, #tpu.memory_space<vmem>>, vector<1x16xf32>
    %c1 = arith.constant 1 : index
    %c0_5 = arith.constant 0 : index
    %3 = vector.load %arg3[%c1, %c0_5] : memref<2x16xf32, #tpu.memory_space<vmem>>, vector<1x16xf32>
    %c0_6 = arith.constant 0 : index
    %c0_7 = arith.constant 0 : index
    %4 = vector.load %arg4[%c0_6, %c0_7] : memref<32x96xf32, #tpu.memory_space<vmem>>, vector<32x96xf32>
    %cst = arith.constant dense<0.000000e+00> : vector<32x16xf32>
    %5 = tpu.matmul %4, %0, %cst {dimension_numbers = #tpu.dot_dimension_numbers<[1], [0], [0], [1], [0, 0, 1, 1], [], []>} : vector<32x96xf32>, vector<96x16xf32>, vector<32x16xf32> -> vector<32x16xf32>
    %c0_8 = arith.constant 0 : index
    %c0_9 = arith.constant 0 : index
    %6 = vector.load %arg5[%c0_8, %c0_9] : memref<32x1xf32, #tpu.memory_space<vmem>>, vector<32x1xf32>
    %7 = vector.broadcast %6 : vector<32x1xf32> to vector<32x16xf32>
    %8 = arith.addf %5, %7 : vector<32x16xf32>
    %9 = math.tanh %8 : vector<32x16xf32>
    %c0_10 = arith.constant 0 : index
    %c0_11 = arith.constant 0 : index
    %10 = vector.load %arg6[%c0_10, %c0_11] : memref<3x32xf32, #tpu.memory_space<vmem>>, vector<3x32xf32>
    %cst_12 = arith.constant dense<0.000000e+00> : vector<3x16xf32>
    %11 = tpu.matmul %10, %9, %cst_12 {dimension_numbers = #tpu.dot_dimension_numbers<[1], [0], [0], [1], [0, 0, 1, 1], [], []>} : vector<3x32xf32>, vector<32x16xf32>, vector<3x16xf32> -> vector<3x16xf32>
    %cst_13 = arith.constant 0.000000e+00 : f32
    %12 = vector.broadcast %cst_13 : f32 to vector<1x16xf32>
    %13 = arith.cmpf oeq, %3, %12 : vector<1x16xf32>
    %14 = vector.extract_strided_slice %11 {offsets = [0, 0], sizes = [1, 16], strides = [1, 1]} : vector<3x16xf32> to vector<1x16xf32>
    %cst_14 = arith.constant 1.000000e+00 : f32
    %15 = vector.broadcast %cst_14 : f32 to vector<1x16xf32>
    %16 = arith.cmpf oeq, %3, %15 : vector<1x16xf32>
    %17 = vector.extract_strided_slice %11 {offsets = [1, 0], sizes = [1, 16], strides = [1, 1]} : vector<3x16xf32> to vector<1x16xf32>
    %18 = vector.extract_strided_slice %11 {offsets = [2, 0], sizes = [1, 16], strides = [1, 1]} : vector<3x16xf32> to vector<1x16xf32>
    %19 = arith.select %16, %17, %18 : vector<1x16xi1>, vector<1x16xf32>
    %20 = arith.select %13, %14, %19 : vector<1x16xi1>, vector<1x16xf32>
    %21 = math.tanh %20 : vector<1x16xf32>
    %cst_15 = arith.constant 1.000000e+01 : f32
    %22 = vector.broadcast %cst_15 : f32 to vector<1x16xf32>
    %23 = arith.mulf %22, %21 : vector<1x16xf32>
    %24 = arith.addf %23, %2 : vector<1x16xf32>
    %cst_16 = arith.constant 1.000000e+01 : f32
    %25 = vector.broadcast %cst_16 : f32 to vector<1x16xf32>
    %26 = arith.subf %24, %25 : vector<1x16xf32>
    %27 = math.exp %26 : vector<1x16xf32>
    %28 = vector.extract_strided_slice %0 {offsets = [0, 0], sizes = [32, 16], strides = [1, 1]} : vector<96x16xf32> to vector<32x16xf32>
    %29 = vector.broadcast %27 : vector<1x16xf32> to vector<32x16xf32>
    %30 = arith.mulf %28, %29 : vector<32x16xf32>
    %cst_17 = arith.constant dense<0.000000e+00> : vector<32x2xf32>
    %31 = tpu.matmul %30, %1, %cst_17 {dimension_numbers = #tpu.dot_dimension_numbers<[1], [0], [0], [1], [0, 0, 1, 1], [], []>} : vector<32x16xf32>, vector<16x2xf32>, vector<32x2xf32> -> vector<32x2xf32>
    %cst_18 = arith.constant dense<0.000000e+00> : vector<1x2xf32>
    %32 = tpu.matmul %27, %1, %cst_18 {dimension_numbers = #tpu.dot_dimension_numbers<[1], [0], [0], [1], [0, 0, 1, 1], [], []>} : vector<1x16xf32>, vector<16x2xf32>, vector<1x2xf32> -> vector<1x2xf32>
    %33 = tpu.reciprocal %32 {approx = true} : vector<1x2xf32> -> vector<1x2xf32>
    %34 = arith.mulf %32, %33 : vector<1x2xf32>
    %cst_19 = arith.constant 2.000000e+00 : f32
    %35 = vector.broadcast %cst_19 : f32 to vector<1x2xf32>
    %36 = arith.subf %35, %34 : vector<1x2xf32>
    %37 = arith.mulf %33, %36 : vector<1x2xf32>
    %38 = arith.mulf %32, %37 : vector<1x2xf32>
    %cst_20 = arith.constant 2.000000e+00 : f32
    %39 = vector.broadcast %cst_20 : f32 to vector<1x2xf32>
    %40 = arith.subf %39, %38 : vector<1x2xf32>
    %41 = arith.mulf %37, %40 : vector<1x2xf32>
    %42 = vector.broadcast %41 : vector<1x2xf32> to vector<32x2xf32>
    %43 = arith.mulf %31, %42 : vector<32x2xf32>
    %cst_21 = arith.constant dense<0.000000e+00> : vector<1x16xf32>
    %44 = tpu.matmul %41, %1, %cst_21 {dimension_numbers = #tpu.dot_dimension_numbers<[1], [1], [0], [0], [0, 0, 1, 0], [], []>} : vector<1x2xf32>, vector<16x2xf32>, vector<1x16xf32> -> vector<1x16xf32>
    %45 = arith.mulf %27, %44 : vector<1x16xf32>
    %c0_22 = arith.constant 0 : index
    %c0_23 = arith.constant 0 : index
    %46 = vector.load %arg11[%c0_22, %c0_23] : memref<1x16xf32, #tpu.memory_space<vmem>>, vector<1x16xf32>
    tpu.vector_store %arg11[%c0_22, %c0_23], %45 {strides = array<i32>} : memref<1x16xf32, #tpu.memory_space<vmem>>, vector<1x16xf32>,
    %c0_24 = arith.constant 0 : index
    %c0_25 = arith.constant 0 : index
    %47 = vector.load %arg7[%c0_24, %c0_25] : memref<32x32xf32, #tpu.memory_space<vmem>>, vector<32x32xf32>
    %c0_26 = arith.constant 0 : index
    %c0_27 = arith.constant 0 : index
    %48 = vector.load %arg2[%c0_26, %c0_27] : memref<32x2xf32, #tpu.memory_space<vmem>>, vector<32x2xf32>
    %cst_28 = arith.constant dense<0.000000e+00> : vector<32x2xf32>
    %49 = tpu.matmul %47, %48, %cst_28 {dimension_numbers = #tpu.dot_dimension_numbers<[1], [0], [0], [1], [0, 0, 1, 1], [], []>} : vector<32x32xf32>, vector<32x2xf32>, vector<32x2xf32> -> vector<32x2xf32>
    %c0_29 = arith.constant 0 : index
    %c0_30 = arith.constant 0 : index
    %50 = vector.load %arg8[%c0_29, %c0_30] : memref<32x32xf32, #tpu.memory_space<vmem>>, vector<32x32xf32>
    %cst_31 = arith.constant dense<0.000000e+00> : vector<32x2xf32>
    %51 = tpu.matmul %50, %43, %cst_31 {dimension_numbers = #tpu.dot_dimension_numbers<[1], [0], [0], [1], [0, 0, 1, 1], [], []>} : vector<32x32xf32>, vector<32x2xf32>, vector<32x2xf32> -> vector<32x2xf32>
    %52 = arith.addf %49, %51 : vector<32x2xf32>
    %c0_32 = arith.constant 0 : index
    %c0_33 = arith.constant 0 : index
    %53 = vector.load %arg9[%c0_32, %c0_33] : memref<32x1xf32, #tpu.memory_space<vmem>>, vector<32x1xf32>
    %54 = vector.broadcast %53 : vector<32x1xf32> to vector<32x2xf32>
    %55 = arith.addf %52, %54 : vector<32x2xf32>
    %56 = math.tanh %55 : vector<32x2xf32>
    %cst_34 = arith.constant 1.000000e+01 : f32
    %57 = vector.broadcast %cst_34 : f32 to vector<32x2xf32>
    %58 = arith.mulf %57, %56 : vector<32x2xf32>
    %c0_35 = arith.constant 0 : index
    %c0_36 = arith.constant 0 : index
    %59 = vector.load %arg12[%c0_35, %c0_36] : memref<32x2xf32, #tpu.memory_space<vmem>>, vector<32x2xf32>
    tpu.vector_store %arg12[%c0_35, %c0_36], %58 {strides = array<i32>} : memref<32x2xf32, #tpu.memory_space<vmem>>, vector<32x2xf32>,
    return
  }
  func.func @transform_0(%arg0: i32) -> (i32, i32) {
    %c0_i32 = arith.constant 0 : i32
    %c0_i32_0 = arith.constant 0 : i32
    return %c0_i32, %arg0 : i32, i32
  }
  func.func @transform_1(%arg0: i32) -> (i32, i32) {
    %c0_i32 = arith.constant 0 : i32
    %c0_i32_0 = arith.constant 0 : i32
    return %c0_i32, %arg0 : i32, i32
  }
  func.func @transform_2(%arg0: i32) -> (i32, i32) {
    %c0_i32 = arith.constant 0 : i32
    %c0_i32_0 = arith.constant 0 : i32
    return %c0_i32, %arg0 : i32, i32
  }
  func.func @transform_3(%arg0: i32) -> (i32, i32) {
    %c0_i32 = arith.constant 0 : i32
    %c0_i32_0 = arith.constant 0 : i32
    %c0_i32_1 = arith.constant 0 : i32
    return %c0_i32, %c0_i32_0 : i32, i32
  }
  func.func @transform_4(%arg0: i32) -> (i32, i32) {
    %c0_i32 = arith.constant 0 : i32
    %c0_i32_0 = arith.constant 0 : i32
    %c0_i32_1 = arith.constant 0 : i32
    return %c0_i32, %c0_i32_0 : i32, i32
  }
  func.func @transform_5(%arg0: i32) -> (i32, i32) {
    %c0_i32 = arith.constant 0 : i32
    %c0_i32_0 = arith.constant 0 : i32
    %c0_i32_1 = arith.constant 0 : i32
    return %c0_i32, %c0_i32_0 : i32, i32
  }
  func.func @transform_6(%arg0: i32) -> (i32, i32) {
    %c0_i32 = arith.constant 0 : i32
    %c0_i32_0 = arith.constant 0 : i32
    %c0_i32_1 = arith.constant 0 : i32
    return %c0_i32, %c0_i32_0 : i32, i32
  }
  func.func @transform_7(%arg0: i32) -> (i32, i32) {
    %c0_i32 = arith.constant 0 : i32
    %c0_i32_0 = arith.constant 0 : i32
    %c0_i32_1 = arith.constant 0 : i32
    return %c0_i32, %c0_i32_0 : i32, i32
  }
  func.func @transform_8(%arg0: i32) -> (i32, i32) {
    %c0_i32 = arith.constant 0 : i32
    %c0_i32_0 = arith.constant 0 : i32
    %c0_i32_1 = arith.constant 0 : i32
    return %c0_i32, %c0_i32_0 : i32, i32
  }
  func.func @transform_9(%arg0: i32) -> (i32, i32) {
    %c0_i32 = arith.constant 0 : i32
    %c0_i32_0 = arith.constant 0 : i32
    %c0_i32_1 = arith.constant 0 : i32
    return %c0_i32, %c0_i32_0 : i32, i32
  }
  func.func @transform_10(%arg0: i32) -> (i32, i32) {
    %c0_i32 = arith.constant 0 : i32
    %c0_i32_0 = arith.constant 0 : i32
    return %c0_i32, %arg0 : i32, i32
  }
  func.func @transform_11(%arg0: i32) -> (i32, i32) {
    %c0_i32 = arith.constant 0 : i32
    %c0_i32_0 = arith.constant 0 : i32
    return %c0_i32, %arg0 : i32, i32
  }
}

</mosaic_0001>

<bundles_post_ra>
// kernel: attention_forward.1
= control target key start
LH: loop header
LB: loop body
LE: loop exit
PB: predicated region body
PF: predicated region fallthrough
CT: control target
= control target key end

     0   :  { %v995_v2 = vmov 0   ;;  %vm81_vm0 = vcmask 785408   ;;  %v996_v25 = vmov 0.0   ;;  %vm997_vm1 = vmmov 0   ;;  %s1255_s0 = inlined_call_operand.vmem [shape: f32[96,16], index: 0, kind: input, shape index: {}]   ;;  %s1256_s3 = inlined_call_operand.vmem [shape: f32[32,96], index: 3, kind: input, shape index: {}]   ;;  %s1257_s4 = inlined_call_operand.vmem [shape: f32[32,1], index: 4, kind: input, shape index: {}]   ;;  %s1258_s8 = inlined_call_operand.vmem [shape: f32[32,1], index: 8, kind: input, shape index: {}]   ;;  %s1259_s5 = inlined_call_operand.vmem [shape: f32[3,32], index: 5, kind: input, shape index: {}]   ;;  %s1260_s9 = inlined_call_operand.vmem [shape: f32[16,2], index: 9, kind: input, shape index: {}]   ;;  %s1261_s2 = inlined_call_operand.vmem [shape: f32[2,16], index: 2, kind: input, shape index: {}]   ;;  %s1262_s1 = inlined_call_operand.vmem [shape: f32[32,2], index: 1, kind: input, shape index: {}]   ;;  %s1263_s7 = inlined_call_operand.vmem [shape: f32[32,32], index: 7, kind: input, shape index: {}]   ;;  %s1264_s6 = inlined_call_operand.vmem [shape: f32[32,32], index: 6, kind: input, shape index: {}]   ;;  %s1265_s10 = inlined_call_operand.vmem [shape: f32[1,16], index: 10, kind: output, shape index: {0}]   ;;  %s1266_s11 = inlined_call_operand.vmem [shape: f32[32,2], index: 11, kind: output, shape index: {1}]  }
   0x1   :  { %v48_v0 = vld [vmem:[%s1255_s0 + $0x58] sm:$0xff]  ;;  %v47_v1 = vld [vmem:[%s1255_s0 + $0x50] sm:$0xff]  ;;  %971 = vset.pattern.permute.xlu0 %v995_v2  ;;  %972 = vset.pattern.permute.xlu1 %v995_v2  ;;  %v46_v3 = vld [vmem:[%s1255_s0 + $0x48] sm:$0xff]  ;;  %vm184_vm2 = vcmask 261120   ;;  %v273_v58 = vlaneseq  ;;  %vm281_vm5 = vcmask 130048   ;;  %vm467_vm6 = vcmask 15360  }
   0x2   :  { %875 = vmatprep.subr.mxu0 %v48_v0  ;;  %v45_v4 = vld [vmem:[%s1255_s0 + $0x40] sm:$0xff]  ;;  %v60_v6 = vld [vmem:[%s1257_s4 + $0x18] sm:$0xff]  ;;  %v58_v8 = vld [vmem:[%s1257_s4 + $0x8] sm:$0xff]  ;;  %905 = vmatprep.subr.mxu1 %v996_v25  ;;  %vm548_vm7 = vcmask 122880  }
   0x3   :  { %876 = vmatpush3.msra.mxu0 %v48_v0  ;;  %v53_v5 = vld [vmem:[%s1256_s3] sm:$0xff]  ;;  %v44_v7 = vld [vmem:[%s1255_s0 + $0x38] sm:$0xff]  ;;  %78 = vperm.xlu0 %971, %v60_v6   ;;  %v59_v9 = vld [vmem:[%s1257_s4 + $0x10] sm:$0xff]  ;;  %v274_v59 = vshrl.u32 %v273_v58, 7 }
   0x4   :  { %877 = vmatprep.subr.mxu0 %v47_v1  ;;  %899 = vmatprep.mubr.msk.f32.mxu0 %vm81_vm0, %v53_v5  ;;  %v43_v10 = vld [vmem:[%s1255_s0 + $0x30] sm:$0xff]  ;;  %v57_v11 = vld [vmem:[%s1257_s4] sm:$0xff]  ;;  %v42_v12 = vld [vmem:[%s1255_s0 + $0x28] sm:$0xff] }
   0x5   :  { %878 = vmatpush3.msra.mxu0 %v47_v1  ;;  %68 = vperm.xlu1 %972, %v58_v8   ;;  %v756_v13 = vld [vmem:[%s1258_s8] sm:$0xff]  ;;  %v757_v15 = vld [vmem:[%s1258_s8 + $0x8] sm:$0xff]  ;;  %v1107_v16 = vld [vmem:[%s1255_s0 + $0x18] sm:$0xff]  ;;  %v275_v60 = vsub.s32 0, %v274_v59 }
   0x6   :  { %879 = vmatprep.subr.mxu0 %v46_v3  ;;  %v41_v14 = vld [vmem:[%s1255_s0 + $0x20] sm:$0xff]  ;;  %v758_v17 = vld [vmem:[%s1258_s8 + $0x10] sm:$0xff]  ;;  %v759_v19 = vld [vmem:[%s1258_s8 + $0x18] sm:$0xff]  ;;  %913 = vmatprep.mubr.msk.f32.mxu1 %vm997_vm1, %v996_v25 }
   0x7   :  { %880 = vmatpush3.msra.mxu0 %v46_v3  ;;  %73 = vperm.xlu0 %971, %v59_v9   ;;  %v1115_v18 = vld [vmem:[%s1255_s0 + $0x10] sm:$0xff]  ;;  %v1125_v20 = vld [vmem:[%s1255_s0 + $0x8] sm:$0xff]  ;;  %v1132_v21 = vld [vmem:[%s1255_s0] sm:$0xff] }
   0x8   :  { %881 = vmatprep.subr.mxu0 %v45_v4  ;;  %v54_v22 = vld [vmem:[%s1256_s3 + $0x8] sm:$0xff]  ;;  %v55_v23 = vld [vmem:[%s1256_s3 + $0x10] sm:$0xff]  ;;  %v56_v24 = vld [vmem:[%s1256_s3 + $0x18] sm:$0xff] }
   0x9   :  { %882 = vmatpush3.msra.mxu0 %v45_v4  ;;  %63 = vperm.xlu1 %972, %v57_v11   ;;  %v183_v41 = vld [vmem:[%s1259_s5] sm:$0x7]  ;;  %v50_v43 = vld [vmem:[%s1260_s9 + $0x8] sm:$0xff]  ;;  %v557_v3 = vld [vmem:[%s1262_s1 + $0x18] sm:$0xff] }
   0xa   :  { %883 = vmatprep.subr.mxu0 %v44_v7  ;;  %v49_v44 = vld [vmem:[%s1260_s9] sm:$0xff] }
   0xb   :  { %884 = vmatpush3.msra.mxu0 %v44_v7  ;;  %762 = vperm.xlu0 %971, %v756_v13   ;;  %v52_v45 = vld [vmem:[%s1261_s2 + $0x1] sm:$0x1]  ;;  %v51_v53 = vld [vmem:[%s1261_s2] sm:$0x1] }
   0xc   :  { %885 = vmatprep.subr.mxu0 %v43_v10  ;;  %vm259_vm3 = vcmp.eq.f32.partialorder %v52_v45, 1.0  ;;  %vm258_vm4 = vcmp.eq.f32.partialorder %v52_v45, 0.0  ;;  %v558_v4 = vld [vmem:[%s1263_s7] sm:$0xff] }
   0xd   :  { %886 = vmatpush3.msra.mxu0 %v43_v10  ;;  %767 = vperm.xlu1 %972, %v757_v15  }
   0xe   :  { %887 = vmatprep.subr.mxu0 %v42_v12 }
   0xf   :  { %888 = vmatpush3.msra.mxu0 %v42_v12  ;;  %772 = vperm.xlu0 %971, %v758_v17  }
  0x10   :  { %889 = vmatprep.subr.mxu0 %v41_v14 }
  0x11   :  { %890 = vmatpush3.msra.mxu0 %v41_v14  ;;  %777 = vperm.xlu1 %972, %v759_v19   ;;  %v556_v19 = vld [vmem:[%s1262_s1 + $0x10] sm:$0xff] }
  0x12   :  { %891 = vmatprep.subr.mxu0 %v1107_v16 }
  0x13   :  { %892 = vmatpush3.msra.mxu0 %v1107_v16 }
  0x14   :  { %893 = vmatprep.subr.mxu0 %v1115_v18 }
  0x15   :  { %894 = vmatpush3.msra.mxu0 %v1115_v18 }
  0x16   :  { %895 = vmatprep.subr.mxu0 %v1125_v20 }
  0x17   :  { %896 = vmatpush3.msra.mxu0 %v1125_v20 }
  0x18   :  { %897 = vmatprep.subr.mxu0 %v1132_v21 }
  0x19   :  { %898 = vmatpush3.msra.mxu0 %v1132_v21 }
  0x1a   :  { %900 = vmatmul.mubr.msk.f32.vlgmr.msra.gmra.mxu0 %vm81_vm0, %v54_v22 }
  0x1b   :  { %902 = vmatprep.mubr.msk.f32.mxu0 %vm81_vm0, %v55_v23  ;;  %v554_v23 = vld [vmem:[%s1262_s1] sm:$0xff] }
  0x1e   :  { %903 = vmatmul.mubr.msk.f32.gmra.mxu0 %vm81_vm0, %v56_v24 }
  0x1f   :  { %948 = vmatprep.mubr.msk.f32.mxu0 %vm184_vm2, %v558_v4 }
  0x7e   :  { %v79_v26 = vpop.permute.xlu0 %78 }
  0x80   :  { %v69_v28 = vpop.permute.xlu1 %68 }
  0x82   :  { %v74_v32 = vpop.permute.xlu0 %73 }
  0x84   :  { %v64_v36 = vpop.permute.xlu1 %63 }
  0xda   :  { %v901_v27 = vpop.f32.mrf.mxu0 }
  0xdb   :  { %v166_v34 = vadd.f32 %v901_v27, %v69_v28  ;;  %v552_v27 = vld [vmem:[%s1264_s6 + $0x10] sm:$0xff] }
  0xdc   :  { %v160_v29 = vpop.f32.mrf.mxu0 }
  0xdd   :  { %v161_v37 = vadd.f32 %v160_v29, %v64_v36  ;;  %v559_v29 = vld [vmem:[%s1263_s7 + $0x8] sm:$0xff] }
  0xde   :  { %v904_v30 = vpop.f32.mrf.mxu0 }
  0xdf   :  { %v176_v31 = vadd.f32 %v904_v30, %v79_v26  ;;  %v553_v30 = vld [vmem:[%s1264_s6 + $0x18] sm:$0xff] }
  0xe0   :  { %v170_v33 = vpop.f32.mrf.mxu0 }
  0xe1   :  { %973 = vtanh.f32 %v176_v31  ;;  %v171_v35 = vadd.f32 %v170_v33, %v74_v32  ;;  %v560_v31 = vld [vmem:[%s1263_s7 + $0x10] sm:$0xff]  ;;  %v561_v32 = vld [vmem:[%s1263_s7 + $0x18] sm:$0xff] }
  0xe3   :  { %975 = vtanh.f32 %v171_v35 }
  0xe4   :  { %977 = vtanh.f32 %v166_v34 }
  0xe5   :  { %979 = vtanh.f32 %v161_v37 }
  0xee   :  { %v974_v38 = vpop.eup %973 }
  0xef   :  { %906 = vmatpush3.msra.mxu1 %v974_v38  ;;  %v768_v38 = vpop.permute.xlu1 %767 }
  0xf0   :  { %v976_v39 = vpop.eup %975  ;;  %907 = vmatprep.subr.mxu1 %v996_v25 }
  0xf1   :  { %908 = vmatpush3.msra.mxu1 %v976_v39  ;;  %v978_v40 = vpop.eup %977 }
  0xf2   :  { %909 = vmatprep.subr.mxu1 %v996_v25  ;;  %v980_v42 = vpop.eup %979 }
  0xf3   :  { %910 = vmatpush3.msra.mxu1 %v978_v40  ;;  %v763_v40 = vpop.permute.xlu0 %762 }
  0xf4   :  { %911 = vmatprep.subr.mxu1 %v996_v25 }
  0xf5   :  { %912 = vmatpush3.msra.mxu1 %v980_v42 }
  0xf6   :  { %914 = vmatmul.mubr.msk.f32.vlgmr.msra.gmra.mxu1 %vm184_vm2, %v183_v41  ;;  %916 = vmatprep.subr.mxu1 %v50_v43 }
  0xf7   :  { %917 = vmatpush3.msra.mxu1 %v50_v43 }
  0xf8   :  { %918 = vmatprep.subr.mxu1 %v49_v44 }
  0xf9   :  { %919 = vmatpush3.msra.mxu1 %v49_v44 }
  0xfa   :  { %926 = vmatprep.subr.mxu1 %v996_v25 }
 0x1b6   :  { %v254_v46 = vpop.f32.mrf.mxu1 }
 0x1b7   :  { %v261_v47 = vrot.slane %v254_v46, 1  ;;  %v263_v48 = vrot.slane %v254_v46, 2 }
 0x1b8   :  { %v915_v49 = vpop.f32.mrf.mxu1 }
 0x1b9   :  { %v265_v50 = vsel %vm259_vm3, %v261_v47, %v263_v48  ;;  %v778_v47 = vpop.permute.xlu1 %777 }
 0x1ba   :  { %v266_v51 = vsel %vm258_vm4, %v254_v46, %v265_v50 }
 0x1bb   :  { %981 = vtanh.f32 %v266_v51 }
 0x1c8   :  { %v982_v52 = vpop.eup %981 }
 0x1c9   :  { %v268_v54 = vmul.f32 10.0, %v982_v52 }
 0x1cb   :  { %v269_v55 = vadd.f32 %v268_v54, %v51_v53  ;;  %v773_v54 = vpop.permute.xlu0 %772 }
 0x1cd   :  { %v809_v56 = vadd.f32 -10.0, %v269_v55 }
 0x1cf   :  { %v271_v57 = vmul.f32 1.442695, %v809_v56 }
 0x1d1   :  { %983 = vpow2.f32 %v271_v57 }
 0x1de   :  { %v1173_v61 = vpop.eup %983 }
 0x1df   :  { %v276_v62 = vrot.slane %v1173_v61, %v275_v60 }
 0x1e1   :  { %v277_v63 = vmul.f32 %v276_v62, %v1132_v21  ;;  %v278_v0 = vmul.f32 %v276_v62, %v1125_v20  ;;  %v279_v1 = vmul.f32 %v276_v62, %v1115_v18  ;;  %v280_v2 = vmul.f32 %v276_v62, %v1107_v16  ;;  %v550_v18 = vld [vmem:[%s1264_s6] sm:$0xff]  ;;  %v555_v21 = vld [vmem:[%s1262_s1 + $0x8] sm:$0xff] }
 0x1e3   :  { %920 = vmatprep.mubr.msk.f32.mxu1 %vm281_vm5, %v277_v63 }
 0x1e4   :  { %921 = vmatmul.mubr.msk.f32.vlgmr.msra.gmra.mxu1 %vm281_vm5, %v278_v0 }
 0x1e5   :  { %923 = vmatprep.mubr.msk.f32.mxu1 %vm281_vm5, %v279_v1  ;;  %927 = vmatpush3.msra.mxu1 %v50_v43 }
 0x1e6   :  { %928 = vmatprep.subr.mxu1 %v996_v25 }
 0x1e7   :  { %929 = vmatpush3.msra.mxu1 %v49_v44 }
 0x1e8   :  { %924 = vmatmul.mubr.msk.f32.gmra.mxu1 %vm281_vm5, %v280_v2  ;;  %933 = vmatprep.subr.mxu1 %v996_v25 }
 0x1e9   :  { %930 = vmatprep.mubr.msk.f32.mxu1 %vm997_vm1, %v996_v25 }
 0x1ec   :  { %931 = vmatmul.mubr.msk.f32.vlgmr.msra.gmra.mxu1 %vm281_vm5, %v1173_v61 }
 0x1ed   :  { %937 = vmatprep.mubr.msk.f32.mxu1 %vm997_vm1, %v996_v25  ;;  %934 = vmatpush3.xpose.msk.msra.mxu1 %vm467_vm6, %v50_v43 }
 0x1ee   :  { %935 = vmatprep.subr.mxu1 %v996_v25  ;;  %v551_v25 = vld [vmem:[%s1264_s6 + $0x8] sm:$0xff] }
 0x1f1   :  { %936 = vmatpush3.xpose.msk.msra.mxu1 %vm467_vm6, %v49_v44 }
 0x1f2   :  { %954 = vmatprep.subr.mxu1 %v557_v3 }
 0x2a4   :  { %v922_v5 = vpop.f32.mrf.mxu1 }
 0x2a6   :  { %v360_v6 = vpop.f32.mrf.mxu1 }
 0x2a8   :  { %v925_v7 = vpop.f32.mrf.mxu1 }
 0x2aa   :  { %v370_v8 = vpop.f32.mrf.mxu1 }
 0x2ac   :  { %v448_v9 = vpop.f32.mrf.mxu1 }
 0x2ad   :  { %985 = vrcp.f32 %v448_v9 }
 0x2ae   :  { %v932_v10 = vpop.f32.mrf.mxu1 }
 0x2ba   :  { %v986_v11 = vpop.eup %985 }
 0x2bb   :  { %v453_v12 = vmul.f32 %v986_v11, %v448_v9 }
 0x2bd   :  { %v454_v13 = vsub.f32 2.0, %v453_v12 }
 0x2bf   :  { %v455_v14 = vmul.f32 %v986_v11, %v454_v13 }
 0x2c1   :  { %v456_v15 = vmul.f32 %v455_v14, %v448_v9 }
 0x2c3   :  { %v457_v16 = vsub.f32 2.0, %v456_v15 }
 0x2c5   :  { %v458_v17 = vmul.f32 %v457_v16, %v455_v14 }
 0x2c7   :  { %v462_v20 = vrot.slane %v458_v17, %v275_v60  ;;  %938 = vmatmul.mubr.msk.f32.vlgmr.msra.gmra.mxu1 %vm467_vm6, %v458_v17 }
 0x2c8   :  { %955 = vmatpush3.msra.mxu1 %v557_v3  ;;  %962 = vmatprep.mubr.msk.f32.mxu1 %vm184_vm2, %v550_v18 }
 0x2c9   :  { %v466_v22 = vmul.f32 %v925_v7, %v462_v20  ;;  %956 = vmatprep.subr.mxu1 %v556_v19  ;;  %v465_v24 = vmul.f32 %v462_v20, %v370_v8  ;;  %v464_v26 = vmul.f32 %v922_v5, %v462_v20  ;;  %v463_v28 = vmul.f32 %v462_v20, %v360_v6 }
 0x2ca   :  { %957 = vmatpush3.msra.mxu1 %v556_v19 }
 0x2cb   :  { %940 = vmatprep.subr.mxu0 %v466_v22  ;;  %958 = vmatprep.subr.mxu1 %v555_v21 }
 0x2cc   :  { %941 = vmatpush3.msra.mxu0 %v466_v22  ;;  %959 = vmatpush3.msra.mxu1 %v555_v21 }
 0x2cd   :  { %942 = vmatprep.subr.mxu0 %v465_v24  ;;  %960 = vmatprep.subr.mxu1 %v554_v23 }
 0x2ce   :  { %943 = vmatpush3.msra.mxu0 %v465_v24  ;;  %961 = vmatpush3.msra.mxu1 %v554_v23 }
 0x2cf   :  { %944 = vmatprep.subr.mxu0 %v464_v26  ;;  %963 = vmatmul.mubr.msk.f32.vlgmr.msra.gmra.mxu1 %vm184_vm2, %v551_v25 }
 0x2d0   :  { %945 = vmatpush3.msra.mxu0 %v464_v26  ;;  %965 = vmatprep.mubr.msk.f32.mxu1 %vm184_vm2, %v552_v27 }
 0x2d1   :  { %946 = vmatprep.subr.mxu0 %v463_v28 }
 0x2d2   :  { %947 = vmatpush3.msra.mxu0 %v463_v28 }
 0x2d3   :  { %949 = vmatmul.mubr.msk.f32.vlgmr.msra.gmra.mxu0 %vm184_vm2, %v559_v29  ;;  %966 = vmatmul.mubr.msk.f32.gmra.mxu1 %vm184_vm2, %v553_v30 }
 0x2d4   :  { %951 = vmatprep.mubr.msk.f32.mxu0 %vm184_vm2, %v560_v31 }
 0x2d7   :  { %952 = vmatmul.mubr.msk.f32.gmra.mxu0 %vm184_vm2, %v561_v32 }
 0x387   :  { %v543_v33 = vpop.f32.mrf.mxu1 }
 0x388   :  { %v547_v34 = vmul.f32 %v1173_v61, %v543_v33 }
 0x389   :  { %v939_v35 = vpop.f32.mrf.mxu1 }
 0x38a   :  { %549 = vst.msk [vmem:[%s1265_s10] sm:$0x1] %vm548_vm7, %v547_v34 }
 0x38f   :  { %v964_v36 = vpop.f32.mrf.mxu1 }
 0x391   :  { %v737_v37 = vpop.f32.mrf.mxu1 }
 0x393   :  { %v950_v39 = vpop.f32.mrf.mxu0  ;;  %v967_v43 = vpop.f32.mrf.mxu1 }
 0x394   :  { %v743_v41 = vadd.f32 %v964_v36, %v950_v39 }
 0x395   :  { %v640_v42 = vpop.f32.mrf.mxu0  ;;  %v747_v50 = vpop.f32.mrf.mxu1 }
 0x396   :  { %v781_v44 = vadd.f32 %v768_v38, %v743_v41  ;;  %v738_v45 = vadd.f32 %v737_v37, %v640_v42 }
 0x397   :  { %v953_v46 = vpop.f32.mrf.mxu0 }
 0x398   :  { %987 = vtanh.f32 %v781_v44  ;;  %v780_v48 = vadd.f32 %v763_v40, %v738_v45  ;;  %v753_v49 = vadd.f32 %v967_v43, %v953_v46 }
 0x399   :  { %v650_v51 = vpop.f32.mrf.mxu0 }
 0x39a   :  { %989 = vtanh.f32 %v780_v48  ;;  %v783_v52 = vadd.f32 %v778_v47, %v753_v49  ;;  %v748_v53 = vadd.f32 %v747_v50, %v650_v51 }
 0x39c   :  { %991 = vtanh.f32 %v783_v52  ;;  %v782_v55 = vadd.f32 %v773_v54, %v748_v53 }
 0x39e   :  { %993 = vtanh.f32 %v782_v55 }
 0x3a5   :  { %v988_v56 = vpop.eup %987 }
 0x3a6   :  { %v789_v57 = vmul.f32 10.0, %v988_v56 }
 0x3a7   :  { %v990_v58 = vpop.eup %989 }
 0x3a8   :  { %793 = vst.msk [vmem:[%s1266_s11 + $0x8] sm:$0xff] %vm467_vm6, %v789_v57  ;;  %v788_v59 = vmul.f32 10.0, %v990_v58 }
 0x3a9   :  { %v992_v60 = vpop.eup %991 }
 0x3aa   :  { %792 = vst.msk [vmem:[%s1266_s11] sm:$0xff] %vm467_vm6, %v788_v59  ;;  %v791_v61 = vmul.f32 10.0, %v992_v60 }
 0x3ab   :  { %v994_v62 = vpop.eup %993 }
 0x3ac   :  { %795 = vst.msk [vmem:[%s1266_s11 + $0x18] sm:$0xff] %vm467_vm6, %v791_v61  ;;  %v790_v63 = vmul.f32 10.0, %v994_v62 }
 0x3ae   :  { %794 = vst.msk [vmem:[%s1266_s11 + $0x10] sm:$0xff] %vm467_vm6, %v790_v63 }

</bundles_post_ra>
